<compile_context>
chip_gen: v7x
topology: tpu7x:2x2x1
jax: 0.10.0
libtpu: 0.0.40
codegen_flags: <defaults>
</compile_context>

<pallas_src>
import math

import jax
import jax.numpy as jnp
from jax.experimental import pallas as pl
from jax.experimental.pallas import tpu as pltpu


def _embedding_kernel(ids_ref, table_hbm, pe_ref, out_ref, rows_vmem, sems):
    # ids_ref   : SMEM (B*S,) int32      (scalar-prefetched, flattened ids)
    # table_hbm : HBM  (V, D)            (memory_space=pl.ANY, manual DMA)
    # pe_ref    : VMEM (CHUNK, D)        (positional-encoding tile)
    # out_ref   : VMEM (CHUNK, D)        (output tile for (b, chunk c))
    # rows_vmem : VMEM (CHUNK, D)        scratch for the gathered rows
    # sems      : DMA semaphores (CHUNK,)
    b = pl.program_id(0)
    c = pl.program_id(1)
    chunk, _ = out_ref.shape
    vocab = table_hbm.shape[0]
    base = (b * pl.num_programs(1) + c) * chunk  # flat index of first token

    # Issue all CHUNK row-gather DMAs up front (fully static unrolled loop).
    for i in range(chunk):
        tok = ids_ref[base + i]
        # Clamp to valid range: an OOB id would otherwise trigger a DMA
        # bounds fault.  No-op for valid inputs.
        tok = jnp.clip(tok, 0, vocab - 1)
        pltpu.make_async_copy(
            table_hbm.at[pl.ds(tok, 1), :],
            rows_vmem.at[pl.ds(i, 1), :],
            sems.at[i],
        ).start()

    # Wait for all gathers to land.
    for i in range(chunk):
        pltpu.make_async_copy(
            table_hbm.at[pl.ds(0, 1), :],       # shape-matching descriptor
            rows_vmem.at[pl.ds(i, 1), :],
            sems.at[i],
        ).wait()

    # Single dense (CHUNK, D) add + store (full-vreg vadd, unmasked vst).
    out_ref[...] = rows_vmem[...] + pe_ref[...]


def embedding_forward(ids, table, pe, *, chunk=None):
    """ids: (B, S) int32, table: (V, D) f32, pe: (1, S, D) f32 -> (B, S, D) f32."""
    B, S = ids.shape
    V, D = table.shape
    assert pe.shape == (1, S, D)

    if chunk is None:
        chunk = S if S <= 128 else 128
    assert S % chunk == 0, "sequence length must be a multiple of the chunk size"

    ids_flat = ids.reshape(B * S).astype(jnp.int32)   # 1-D -> cheap SMEM layout
    num_chunks = S // chunk

    return pl.pallas_call(
        _embedding_kernel,
        out_shape=jax.ShapeDtypeStruct((B, S, D), table.dtype),
        grid_spec=pltpu.PrefetchScalarGridSpec(
            num_scalar_prefetch=1,                     # ids -> SMEM
            grid=(B, num_chunks),
            in_specs=[
                # Token table stays in HBM; rows gathered manually via DMA.
                pl.BlockSpec(memory_space=pl.ANY),
                # Positional-encoding tile for this chunk (batch-invariant).
                pl.BlockSpec((None, chunk, D), lambda b, c, ids: (0, c, 0)),
            ],
            out_specs=pl.BlockSpec((None, chunk, D), lambda b, c, ids: (b, c, 0)),
            scratch_shapes=[
                pltpu.VMEM((chunk, D), table.dtype),
                pltpu.SemaphoreType.DMA((chunk,)),
            ],
        ),
        compiler_params=pltpu.CompilerParams(
            dimension_semantics=("parallel", "parallel"),
        ),
    )(ids_flat, table, pe)


def position_embedding(max_num_tokens, dims):
    """Sinusoidal PE identical to the PyTorch reference. Returns (1, T, D)."""
    position = jnp.arange(max_num_tokens, dtype=jnp.float32)[:, None]
    div_term = jnp.exp(
        jnp.arange(0, dims, 2, dtype=jnp.float32) * -(math.log(10000.0) / dims)
    )
    pe = jnp.zeros((max_num_tokens, dims), dtype=jnp.float32)
    pe = pe.at[:, 0::2].set(jnp.sin(position * div_term))
    pe = pe.at[:, 1::2].set(jnp.cos(position * div_term))
    return pe[None]


def init_params(key, vocab_size, dims):
    """nn.Embedding default init: N(0, 1); padding_idx=0 row zeroed."""
    table = jax.random.normal(key, (vocab_size, dims), dtype=jnp.float32)
    table = table.at[0].set(0.0)
    return table


if __name__ == "__main__":
    # Small, module-consistent shapes (D lane-aligned, S sublane-aligned).
    vocab_size = 32
    dims = 128           # hidden size
    max_num_tokens = 8   # = sequence length (required by the pe broadcast)
    batch = 2
    dropout = 0.1        # eval mode -> identity

    key = jax.random.PRNGKey(0)
    k_tab, k_ids = jax.random.split(key)

    table = init_params(k_tab, vocab_size, dims)
    pe = position_embedding(max_num_tokens, dims)
    ids = jax.random.randint(
        k_ids, (batch, max_num_tokens), 0, vocab_size, dtype=jnp.int32
    )

    out = embedding_forward(ids, table, pe)
    out = jax.block_until_ready(out)

    # Pure-JAX reference (eval-mode dropout = identity).
    ref = jnp.take(table, ids, axis=0) + pe
    assert out.shape == (batch, max_num_tokens, dims)
    assert jnp.allclose(out, ref, atol=1e-6), "mismatch vs reference"

    print("KERNEL_OK")
</pallas_src>

<mosaic_0001>
module attributes {stable_mosaic.version = 11 : i64} {
  func.func @_embedding_kernel(%arg0: i32, %arg1: i32, %arg2: memref<16xi32, #tpu.memory_space<smem>>, %arg3: memref<32x128xf32, #tpu.memory_space<any>>, %arg4: memref<1x8x128xf32, #tpu.memory_space<vmem>>, %arg5: memref<1x8x128xf32, #tpu.memory_space<vmem>>, %arg6: memref<8x128xf32, #tpu.memory_space<vmem>>, %arg7: memref<8x!tpu.dma_semaphore, #tpu.memory_space<semaphore_mem>>) attributes {dimension_semantics = [#tpu.dimension_semantics<parallel>, #tpu.dimension_semantics<parallel>], iteration_bounds = array<i64: 2, 1>, scalar_prefetch = 1 : i64, scratch_operands = 2 : i64, tpu.core_type = #tpu.core_type<tc>, window_params = [{}, {transform_indices = @transform_1, window_bounds = array<i64: 1, 8, 128>}, {transform_indices = @transform_2, window_bounds = array<i64: 1, 8, 128>}]} {
    %c1_i32 = arith.constant 1 : i32
    %0 = arith.muli %arg0, %c1_i32 : i32
    %1 = arith.addi %0, %arg1 : i32
    %c8_i32 = arith.constant 8 : i32
    %2 = arith.muli %1, %c8_i32 : i32
    %c0_i32 = arith.constant 0 : i32
    %3 = arith.addi %2, %c0_i32 : i32
    %4 = arith.index_cast %3 : i32 to index
    %5 = memref.load %arg2[%4] : memref<16xi32, #tpu.memory_space<smem>>
    %c0_i32_0 = arith.constant 0 : i32
    %c31_i32 = arith.constant 31 : i32
    %6 = arith.maxsi %c0_i32_0, %5 : i32
    %7 = arith.minsi %c31_i32, %6 : i32
    %c0_i32_1 = arith.constant 0 : i32
    %c0_i32_2 = arith.constant 0 : i32
    %8 = tpu.memref_slice %arg3[%7, %c0_i32_2] : memref<32x128xf32, #tpu.memory_space<any>> -> memref<1x128xf32, #tpu.memory_space<any>>
    %c0_i32_3 = arith.constant 0 : i32
    %c0_i32_4 = arith.constant 0 : i32
    %9 = tpu.memref_slice %arg6[%c0_i32_3, %c0_i32_4] : memref<8x128xf32, #tpu.memory_space<vmem>> -> memref<1x128xf32, #tpu.memory_space<vmem>>
    %10 = tpu.memref_slice %arg7[%c0_i32_1] : memref<8x!tpu.dma_semaphore, #tpu.memory_space<semaphore_mem>> -> memref<1x!tpu.dma_semaphore, #tpu.memory_space<semaphore_mem>>
    %11 = tpu.memref_squeeze %10 : memref<1x!tpu.dma_semaphore, #tpu.memory_space<semaphore_mem>> -> memref<!tpu.dma_semaphore, #tpu.memory_space<semaphore_mem>>
    tpu.enqueue_dma source(%8 : memref<1x128xf32, #tpu.memory_space<any>>) target(%9 : memref<1x128xf32, #tpu.memory_space<vmem>>) target_semaphore(%11 : memref<!tpu.dma_semaphore, #tpu.memory_space<semaphore_mem>>)
    %c1_i32_5 = arith.constant 1 : i32
    %12 = arith.addi %2, %c1_i32_5 : i32
    %13 = arith.index_cast %12 : i32 to index
    %14 = memref.load %arg2[%13] : memref<16xi32, #tpu.memory_space<smem>>
    %c0_i32_6 = arith.constant 0 : i32
    %c31_i32_7 = arith.constant 31 : i32
    %15 = arith.maxsi %c0_i32_6, %14 : i32
    %16 = arith.minsi %c31_i32_7, %15 : i32
    %c1_i32_8 = arith.constant 1 : i32
    %c0_i32_9 = arith.constant 0 : i32
    %17 = tpu.memref_slice %arg3[%16, %c0_i32_9] : memref<32x128xf32, #tpu.memory_space<any>> -> memref<1x128xf32, #tpu.memory_space<any>>
    %c1_i32_10 = arith.constant 1 : i32
    %c0_i32_11 = arith.constant 0 : i32
    %18 = tpu.memref_slice %arg6[%c1_i32_10, %c0_i32_11] : memref<8x128xf32, #tpu.memory_space<vmem>> -> memref<1x128xf32, #tpu.memory_space<vmem>>
    %19 = tpu.memref_slice %arg7[%c1_i32_8] : memref<8x!tpu.dma_semaphore, #tpu.memory_space<semaphore_mem>> -> memref<1x!tpu.dma_semaphore, #tpu.memory_space<semaphore_mem>>
    %20 = tpu.memref_squeeze %19 : memref<1x!tpu.dma_semaphore, #tpu.memory_space<semaphore_mem>> -> memref<!tpu.dma_semaphore, #tpu.memory_space<semaphore_mem>>
    tpu.enqueue_dma source(%17 : memref<1x128xf32, #tpu.memory_space<any>>) target(%18 : memref<1x128xf32, #tpu.memory_space<vmem>>) target_semaphore(%20 : memref<!tpu.dma_semaphore, #tpu.memory_space<semaphore_mem>>)
    %c2_i32 = arith.constant 2 : i32
    %21 = arith.addi %2, %c2_i32 : i32
    %22 = arith.index_cast %21 : i32 to index
    %23 = memref.load %arg2[%22] : memref<16xi32, #tpu.memory_space<smem>>
    %c0_i32_12 = arith.constant 0 : i32
    %c31_i32_13 = arith.constant 31 : i32
    %24 = arith.maxsi %c0_i32_12, %23 : i32
    %25 = arith.minsi %c31_i32_13, %24 : i32
    %c2_i32_14 = arith.constant 2 : i32
    %c0_i32_15 = arith.constant 0 : i32
    %26 = tpu.memref_slice %arg3[%25, %c0_i32_15] : memref<32x128xf32, #tpu.memory_space<any>> -> memref<1x128xf32, #tpu.memory_space<any>>
    %c2_i32_16 = arith.constant 2 : i32
    %c0_i32_17 = arith.constant 0 : i32
    %27 = tpu.memref_slice %arg6[%c2_i32_16, %c0_i32_17] : memref<8x128xf32, #tpu.memory_space<vmem>> -> memref<1x128xf32, #tpu.memory_space<vmem>>
    %28 = tpu.memref_slice %arg7[%c2_i32_14] : memref<8x!tpu.dma_semaphore, #tpu.memory_space<semaphore_mem>> -> memref<1x!tpu.dma_semaphore, #tpu.memory_space<semaphore_mem>>
    %29 = tpu.memref_squeeze %28 : memref<1x!tpu.dma_semaphore, #tpu.memory_space<semaphore_mem>> -> memref<!tpu.dma_semaphore, #tpu.memory_space<semaphore_mem>>
    tpu.enqueue_dma source(%26 : memref<1x128xf32, #tpu.memory_space<any>>) target(%27 : memref<1x128xf32, #tpu.memory_space<vmem>>) target_semaphore(%29 : memref<!tpu.dma_semaphore, #tpu.memory_space<semaphore_mem>>)
    %c3_i32 = arith.constant 3 : i32
    %30 = arith.addi %2, %c3_i32 : i32
    %31 = arith.index_cast %30 : i32 to index
    %32 = memref.load %arg2[%31] : memref<16xi32, #tpu.memory_space<smem>>
    %c0_i32_18 = arith.constant 0 : i32
    %c31_i32_19 = arith.constant 31 : i32
    %33 = arith.maxsi %c0_i32_18, %32 : i32
    %34 = arith.minsi %c31_i32_19, %33 : i32
    %c3_i32_20 = arith.constant 3 : i32
    %c0_i32_21 = arith.constant 0 : i32
    %35 = tpu.memref_slice %arg3[%34, %c0_i32_21] : memref<32x128xf32, #tpu.memory_space<any>> -> memref<1x128xf32, #tpu.memory_space<any>>
    %c3_i32_22 = arith.constant 3 : i32
    %c0_i32_23 = arith.constant 0 : i32
    %36 = tpu.memref_slice %arg6[%c3_i32_22, %c0_i32_23] : memref<8x128xf32, #tpu.memory_space<vmem>> -> memref<1x128xf32, #tpu.memory_space<vmem>>
    %37 = tpu.memref_slice %arg7[%c3_i32_20] : memref<8x!tpu.dma_semaphore, #tpu.memory_space<semaphore_mem>> -> memref<1x!tpu.dma_semaphore, #tpu.memory_space<semaphore_mem>>
    %38 = tpu.memref_squeeze %37 : memref<1x!tpu.dma_semaphore, #tpu.memory_space<semaphore_mem>> -> memref<!tpu.dma_semaphore, #tpu.memory_space<semaphore_mem>>
    tpu.enqueue_dma source(%35 : memref<1x128xf32, #tpu.memory_space<any>>) target(%36 : memref<1x128xf32, #tpu.memory_space<vmem>>) target_semaphore(%38 : memref<!tpu.dma_semaphore, #tpu.memory_space<semaphore_mem>>)
    %c4_i32 = arith.constant 4 : i32
    %39 = arith.addi %2, %c4_i32 : i32
    %40 = arith.index_cast %39 : i32 to index
    %41 = memref.load %arg2[%40] : memref<16xi32, #tpu.memory_space<smem>>
    %c0_i32_24 = arith.constant 0 : i32
    %c31_i32_25 = arith.constant 31 : i32
    %42 = arith.maxsi %c0_i32_24, %41 : i32
    %43 = arith.minsi %c31_i32_25, %42 : i32
    %c4_i32_26 = arith.constant 4 : i32
    %c0_i32_27 = arith.constant 0 : i32
    %44 = tpu.memref_slice %arg3[%43, %c0_i32_27] : memref<32x128xf32, #tpu.memory_space<any>> -> memref<1x128xf32, #tpu.memory_space<any>>
    %c4_i32_28 = arith.constant 4 : i32
    %c0_i32_29 = arith.constant 0 : i32
    %45 = tpu.memref_slice %arg6[%c4_i32_28, %c0_i32_29] : memref<8x128xf32, #tpu.memory_space<vmem>> -> memref<1x128xf32, #tpu.memory_space<vmem>>
    %46 = tpu.memref_slice %arg7[%c4_i32_26] : memref<8x!tpu.dma_semaphore, #tpu.memory_space<semaphore_mem>> -> memref<1x!tpu.dma_semaphore, #tpu.memory_space<semaphore_mem>>
    %47 = tpu.memref_squeeze %46 : memref<1x!tpu.dma_semaphore, #tpu.memory_space<semaphore_mem>> -> memref<!tpu.dma_semaphore, #tpu.memory_space<semaphore_mem>>
    tpu.enqueue_dma source(%44 : memref<1x128xf32, #tpu.memory_space<any>>) target(%45 : memref<1x128xf32, #tpu.memory_space<vmem>>) target_semaphore(%47 : memref<!tpu.dma_semaphore, #tpu.memory_space<semaphore_mem>>)
    %c5_i32 = arith.constant 5 : i32
    %48 = arith.addi %2, %c5_i32 : i32
    %49 = arith.index_cast %48 : i32 to index
    %50 = memref.load %arg2[%49] : memref<16xi32, #tpu.memory_space<smem>>
    %c0_i32_30 = arith.constant 0 : i32
    %c31_i32_31 = arith.constant 31 : i32
    %51 = arith.maxsi %c0_i32_30, %50 : i32
    %52 = arith.minsi %c31_i32_31, %51 : i32
    %c5_i32_32 = arith.constant 5 : i32
    %c0_i32_33 = arith.constant 0 : i32
    %53 = tpu.memref_slice %arg3[%52, %c0_i32_33] : memref<32x128xf32, #tpu.memory_space<any>> -> memref<1x128xf32, #tpu.memory_space<any>>
    %c5_i32_34 = arith.constant 5 : i32
    %c0_i32_35 = arith.constant 0 : i32
    %54 = tpu.memref_slice %arg6[%c5_i32_34, %c0_i32_35] : memref<8x128xf32, #tpu.memory_space<vmem>> -> memref<1x128xf32, #tpu.memory_space<vmem>>
    %55 = tpu.memref_slice %arg7[%c5_i32_32] : memref<8x!tpu.dma_semaphore, #tpu.memory_space<semaphore_mem>> -> memref<1x!tpu.dma_semaphore, #tpu.memory_space<semaphore_mem>>
    %56 = tpu.memref_squeeze %55 : memref<1x!tpu.dma_semaphore, #tpu.memory_space<semaphore_mem>> -> memref<!tpu.dma_semaphore, #tpu.memory_space<semaphore_mem>>
    tpu.enqueue_dma source(%53 : memref<1x128xf32, #tpu.memory_space<any>>) target(%54 : memref<1x128xf32, #tpu.memory_space<vmem>>) target_semaphore(%56 : memref<!tpu.dma_semaphore, #tpu.memory_space<semaphore_mem>>)
    %c6_i32 = arith.constant 6 : i32
    %57 = arith.addi %2, %c6_i32 : i32
    %58 = arith.index_cast %57 : i32 to index
    %59 = memref.load %arg2[%58] : memref<16xi32, #tpu.memory_space<smem>>
    %c0_i32_36 = arith.constant 0 : i32
    %c31_i32_37 = arith.constant 31 : i32
    %60 = arith.maxsi %c0_i32_36, %59 : i32
    %61 = arith.minsi %c31_i32_37, %60 : i32
    %c6_i32_38 = arith.constant 6 : i32
    %c0_i32_39 = arith.constant 0 : i32
    %62 = tpu.memref_slice %arg3[%61, %c0_i32_39] : memref<32x128xf32, #tpu.memory_space<any>> -> memref<1x128xf32, #tpu.memory_space<any>>
    %c6_i32_40 = arith.constant 6 : i32
    %c0_i32_41 = arith.constant 0 : i32
    %63 = tpu.memref_slice %arg6[%c6_i32_40, %c0_i32_41] : memref<8x128xf32, #tpu.memory_space<vmem>> -> memref<1x128xf32, #tpu.memory_space<vmem>>
    %64 = tpu.memref_slice %arg7[%c6_i32_38] : memref<8x!tpu.dma_semaphore, #tpu.memory_space<semaphore_mem>> -> memref<1x!tpu.dma_semaphore, #tpu.memory_space<semaphore_mem>>
    %65 = tpu.memref_squeeze %64 : memref<1x!tpu.dma_semaphore, #tpu.memory_space<semaphore_mem>> -> memref<!tpu.dma_semaphore, #tpu.memory_space<semaphore_mem>>
    tpu.enqueue_dma source(%62 : memref<1x128xf32, #tpu.memory_space<any>>) target(%63 : memref<1x128xf32, #tpu.memory_space<vmem>>) target_semaphore(%65 : memref<!tpu.dma_semaphore, #tpu.memory_space<semaphore_mem>>)
    %c7_i32 = arith.constant 7 : i32
    %66 = arith.addi %2, %c7_i32 : i32
    %67 = arith.index_cast %66 : i32 to index
    %68 = memref.load %arg2[%67] : memref<16xi32, #tpu.memory_space<smem>>
    %c0_i32_42 = arith.constant 0 : i32
    %c31_i32_43 = arith.constant 31 : i32
    %69 = arith.maxsi %c0_i32_42, %68 : i32
    %70 = arith.minsi %c31_i32_43, %69 : i32
    %c7_i32_44 = arith.constant 7 : i32
    %c0_i32_45 = arith.constant 0 : i32
    %71 = tpu.memref_slice %arg3[%70, %c0_i32_45] : memref<32x128xf32, #tpu.memory_space<any>> -> memref<1x128xf32, #tpu.memory_space<any>>
    %c7_i32_46 = arith.constant 7 : i32
    %c0_i32_47 = arith.constant 0 : i32
    %72 = tpu.memref_slice %arg6[%c7_i32_46, %c0_i32_47] : memref<8x128xf32, #tpu.memory_space<vmem>> -> memref<1x128xf32, #tpu.memory_space<vmem>>
    %73 = tpu.memref_slice %arg7[%c7_i32_44] : memref<8x!tpu.dma_semaphore, #tpu.memory_space<semaphore_mem>> -> memref<1x!tpu.dma_semaphore, #tpu.memory_space<semaphore_mem>>
    %74 = tpu.memref_squeeze %73 : memref<1x!tpu.dma_semaphore, #tpu.memory_space<semaphore_mem>> -> memref<!tpu.dma_semaphore, #tpu.memory_space<semaphore_mem>>
    tpu.enqueue_dma source(%71 : memref<1x128xf32, #tpu.memory_space<any>>) target(%72 : memref<1x128xf32, #tpu.memory_space<vmem>>) target_semaphore(%74 : memref<!tpu.dma_semaphore, #tpu.memory_space<semaphore_mem>>)
    %c0_i32_48 = arith.constant 0 : i32
    %c0_i32_49 = arith.constant 0 : i32
    %c0_i32_50 = arith.constant 0 : i32
    %75 = tpu.memref_slice %arg3[%c0_i32_49, %c0_i32_50] : memref<32x128xf32, #tpu.memory_space<any>> -> memref<1x128xf32, #tpu.memory_space<any>>
    %c0_i32_51 = arith.constant 0 : i32
    %c0_i32_52 = arith.constant 0 : i32
    %76 = tpu.memref_slice %arg6[%c0_i32_51, %c0_i32_52] : memref<8x128xf32, #tpu.memory_space<vmem>> -> memref<1x128xf32, #tpu.memory_space<vmem>>
    %77 = tpu.memref_slice %arg7[%c0_i32_48] : memref<8x!tpu.dma_semaphore, #tpu.memory_space<semaphore_mem>> -> memref<1x!tpu.dma_semaphore, #tpu.memory_space<semaphore_mem>>
    %78 = tpu.memref_squeeze %77 : memref<1x!tpu.dma_semaphore, #tpu.memory_space<semaphore_mem>> -> memref<!tpu.dma_semaphore, #tpu.memory_space<semaphore_mem>>
    tpu.wait_dma2 semaphore(%78 : memref<!tpu.dma_semaphore, #tpu.memory_space<semaphore_mem>>) src(%75 : memref<1x128xf32, #tpu.memory_space<any>>) dst(%76 : memref<1x128xf32, #tpu.memory_space<vmem>>)
    %c1_i32_53 = arith.constant 1 : i32
    %c0_i32_54 = arith.constant 0 : i32
    %c0_i32_55 = arith.constant 0 : i32
    %79 = tpu.memref_slice %arg3[%c0_i32_54, %c0_i32_55] : memref<32x128xf32, #tpu.memory_space<any>> -> memref<1x128xf32, #tpu.memory_space<any>>
    %c1_i32_56 = arith.constant 1 : i32
    %c0_i32_57 = arith.constant 0 : i32
    %80 = tpu.memref_slice %arg6[%c1_i32_56, %c0_i32_57] : memref<8x128xf32, #tpu.memory_space<vmem>> -> memref<1x128xf32, #tpu.memory_space<vmem>>
    %81 = tpu.memref_slice %arg7[%c1_i32_53] : memref<8x!tpu.dma_semaphore, #tpu.memory_space<semaphore_mem>> -> memref<1x!tpu.dma_semaphore, #tpu.memory_space<semaphore_mem>>
    %82 = tpu.memref_squeeze %81 : memref<1x!tpu.dma_semaphore, #tpu.memory_space<semaphore_mem>> -> memref<!tpu.dma_semaphore, #tpu.memory_space<semaphore_mem>>
    tpu.wait_dma2 semaphore(%82 : memref<!tpu.dma_semaphore, #tpu.memory_space<semaphore_mem>>) src(%79 : memref<1x128xf32, #tpu.memory_space<any>>) dst(%80 : memref<1x128xf32, #tpu.memory_space<vmem>>)
    %c2_i32_58 = arith.constant 2 : i32
    %c0_i32_59 = arith.constant 0 : i32
    %c0_i32_60 = arith.constant 0 : i32
    %83 = tpu.memref_slice %arg3[%c0_i32_59, %c0_i32_60] : memref<32x128xf32, #tpu.memory_space<any>> -> memref<1x128xf32, #tpu.memory_space<any>>
    %c2_i32_61 = arith.constant 2 : i32
    %c0_i32_62 = arith.constant 0 : i32
    %84 = tpu.memref_slice %arg6[%c2_i32_61, %c0_i32_62] : memref<8x128xf32, #tpu.memory_space<vmem>> -> memref<1x128xf32, #tpu.memory_space<vmem>>
    %85 = tpu.memref_slice %arg7[%c2_i32_58] : memref<8x!tpu.dma_semaphore, #tpu.memory_space<semaphore_mem>> -> memref<1x!tpu.dma_semaphore, #tpu.memory_space<semaphore_mem>>
    %86 = tpu.memref_squeeze %85 : memref<1x!tpu.dma_semaphore, #tpu.memory_space<semaphore_mem>> -> memref<!tpu.dma_semaphore, #tpu.memory_space<semaphore_mem>>
    tpu.wait_dma2 semaphore(%86 : memref<!tpu.dma_semaphore, #tpu.memory_space<semaphore_mem>>) src(%83 : memref<1x128xf32, #tpu.memory_space<any>>) dst(%84 : memref<1x128xf32, #tpu.memory_space<vmem>>)
    %c3_i32_63 = arith.constant 3 : i32
    %c0_i32_64 = arith.constant 0 : i32
    %c0_i32_65 = arith.constant 0 : i32
    %87 = tpu.memref_slice %arg3[%c0_i32_64, %c0_i32_65] : memref<32x128xf32, #tpu.memory_space<any>> -> memref<1x128xf32, #tpu.memory_space<any>>
    %c3_i32_66 = arith.constant 3 : i32
    %c0_i32_67 = arith.constant 0 : i32
    %88 = tpu.memref_slice %arg6[%c3_i32_66, %c0_i32_67] : memref<8x128xf32, #tpu.memory_space<vmem>> -> memref<1x128xf32, #tpu.memory_space<vmem>>
    %89 = tpu.memref_slice %arg7[%c3_i32_63] : memref<8x!tpu.dma_semaphore, #tpu.memory_space<semaphore_mem>> -> memref<1x!tpu.dma_semaphore, #tpu.memory_space<semaphore_mem>>
    %90 = tpu.memref_squeeze %89 : memref<1x!tpu.dma_semaphore, #tpu.memory_space<semaphore_mem>> -> memref<!tpu.dma_semaphore, #tpu.memory_space<semaphore_mem>>
    tpu.wait_dma2 semaphore(%90 : memref<!tpu.dma_semaphore, #tpu.memory_space<semaphore_mem>>) src(%87 : memref<1x128xf32, #tpu.memory_space<any>>) dst(%88 : memref<1x128xf32, #tpu.memory_space<vmem>>)
    %c4_i32_68 = arith.constant 4 : i32
    %c0_i32_69 = arith.constant 0 : i32
    %c0_i32_70 = arith.constant 0 : i32
    %91 = tpu.memref_slice %arg3[%c0_i32_69, %c0_i32_70] : memref<32x128xf32, #tpu.memory_space<any>> -> memref<1x128xf32, #tpu.memory_space<any>>
    %c4_i32_71 = arith.constant 4 : i32
    %c0_i32_72 = arith.constant 0 : i32
    %92 = tpu.memref_slice %arg6[%c4_i32_71, %c0_i32_72] : memref<8x128xf32, #tpu.memory_space<vmem>> -> memref<1x128xf32, #tpu.memory_space<vmem>>
    %93 = tpu.memref_slice %arg7[%c4_i32_68] : memref<8x!tpu.dma_semaphore, #tpu.memory_space<semaphore_mem>> -> memref<1x!tpu.dma_semaphore, #tpu.memory_space<semaphore_mem>>
    %94 = tpu.memref_squeeze %93 : memref<1x!tpu.dma_semaphore, #tpu.memory_space<semaphore_mem>> -> memref<!tpu.dma_semaphore, #tpu.memory_space<semaphore_mem>>
    tpu.wait_dma2 semaphore(%94 : memref<!tpu.dma_semaphore, #tpu.memory_space<semaphore_mem>>) src(%91 : memref<1x128xf32, #tpu.memory_space<any>>) dst(%92 : memref<1x128xf32, #tpu.memory_space<vmem>>)
    %c5_i32_73 = arith.constant 5 : i32
    %c0_i32_74 = arith.constant 0 : i32
    %c0_i32_75 = arith.constant 0 : i32
    %95 = tpu.memref_slice %arg3[%c0_i32_74, %c0_i32_75] : memref<32x128xf32, #tpu.memory_space<any>> -> memref<1x128xf32, #tpu.memory_space<any>>
    %c5_i32_76 = arith.constant 5 : i32
    %c0_i32_77 = arith.constant 0 : i32
    %96 = tpu.memref_slice %arg6[%c5_i32_76, %c0_i32_77] : memref<8x128xf32, #tpu.memory_space<vmem>> -> memref<1x128xf32, #tpu.memory_space<vmem>>
    %97 = tpu.memref_slice %arg7[%c5_i32_73] : memref<8x!tpu.dma_semaphore, #tpu.memory_space<semaphore_mem>> -> memref<1x!tpu.dma_semaphore, #tpu.memory_space<semaphore_mem>>
    %98 = tpu.memref_squeeze %97 : memref<1x!tpu.dma_semaphore, #tpu.memory_space<semaphore_mem>> -> memref<!tpu.dma_semaphore, #tpu.memory_space<semaphore_mem>>
    tpu.wait_dma2 semaphore(%98 : memref<!tpu.dma_semaphore, #tpu.memory_space<semaphore_mem>>) src(%95 : memref<1x128xf32, #tpu.memory_space<any>>) dst(%96 : memref<1x128xf32, #tpu.memory_space<vmem>>)
    %c6_i32_78 = arith.constant 6 : i32
    %c0_i32_79 = arith.constant 0 : i32
    %c0_i32_80 = arith.constant 0 : i32
    %99 = tpu.memref_slice %arg3[%c0_i32_79, %c0_i32_80] : memref<32x128xf32, #tpu.memory_space<any>> -> memref<1x128xf32, #tpu.memory_space<any>>
    %c6_i32_81 = arith.constant 6 : i32
    %c0_i32_82 = arith.constant 0 : i32
    %100 = tpu.memref_slice %arg6[%c6_i32_81, %c0_i32_82] : memref<8x128xf32, #tpu.memory_space<vmem>> -> memref<1x128xf32, #tpu.memory_space<vmem>>
    %101 = tpu.memref_slice %arg7[%c6_i32_78] : memref<8x!tpu.dma_semaphore, #tpu.memory_space<semaphore_mem>> -> memref<1x!tpu.dma_semaphore, #tpu.memory_space<semaphore_mem>>
    %102 = tpu.memref_squeeze %101 : memref<1x!tpu.dma_semaphore, #tpu.memory_space<semaphore_mem>> -> memref<!tpu.dma_semaphore, #tpu.memory_space<semaphore_mem>>
    tpu.wait_dma2 semaphore(%102 : memref<!tpu.dma_semaphore, #tpu.memory_space<semaphore_mem>>) src(%99 : memref<1x128xf32, #tpu.memory_space<any>>) dst(%100 : memref<1x128xf32, #tpu.memory_space<vmem>>)
    %c7_i32_83 = arith.constant 7 : i32
    %c0_i32_84 = arith.constant 0 : i32
    %c0_i32_85 = arith.constant 0 : i32
    %103 = tpu.memref_slice %arg3[%c0_i32_84, %c0_i32_85] : memref<32x128xf32, #tpu.memory_space<any>> -> memref<1x128xf32, #tpu.memory_space<any>>
    %c7_i32_86 = arith.constant 7 : i32
    %c0_i32_87 = arith.constant 0 : i32
    %104 = tpu.memref_slice %arg6[%c7_i32_86, %c0_i32_87] : memref<8x128xf32, #tpu.memory_space<vmem>> -> memref<1x128xf32, #tpu.memory_space<vmem>>
    %105 = tpu.memref_slice %arg7[%c7_i32_83] : memref<8x!tpu.dma_semaphore, #tpu.memory_space<semaphore_mem>> -> memref<1x!tpu.dma_semaphore, #tpu.memory_space<semaphore_mem>>
    %106 = tpu.memref_squeeze %105 : memref<1x!tpu.dma_semaphore, #tpu.memory_space<semaphore_mem>> -> memref<!tpu.dma_semaphore, #tpu.memory_space<semaphore_mem>>
    tpu.wait_dma2 semaphore(%106 : memref<!tpu.dma_semaphore, #tpu.memory_space<semaphore_mem>>) src(%103 : memref<1x128xf32, #tpu.memory_space<any>>) dst(%104 : memref<1x128xf32, #tpu.memory_space<vmem>>)
    %c0 = arith.constant 0 : index
    %c0_88 = arith.constant 0 : index
    %107 = vector.load %arg6[%c0, %c0_88] : memref<8x128xf32, #tpu.memory_space<vmem>>, vector<8x128xf32>
    %c0_89 = arith.constant 0 : index
    %c0_90 = arith.constant 0 : index
    %c0_91 = arith.constant 0 : index
    %108 = vector.load %arg4[%c0_89, %c0_90, %c0_91] : memref<1x8x128xf32, #tpu.memory_space<vmem>>, vector<1x8x128xf32>
    %109 = vector.shape_cast %108 : vector<1x8x128xf32> to vector<8x128xf32>
    %110 = arith.addf %107, %109 : vector<8x128xf32>
    %c0_92 = arith.constant 0 : index
    %c0_93 = arith.constant 0 : index
    %c0_94 = arith.constant 0 : index
    %111 = vector.load %arg5[%c0_92, %c0_93, %c0_94] : memref<1x8x128xf32, #tpu.memory_space<vmem>>, vector<1x8x128xf32>
    %112 = vector.shape_cast %111 : vector<1x8x128xf32> to vector<8x128xf32>
    %113 = vector.shape_cast %110 : vector<8x128xf32> to vector<1x8x128xf32>
    tpu.vector_store %arg5[%c0_92, %c0_93, %c0_94], %113 {strides = array<i32>} : memref<1x8x128xf32, #tpu.memory_space<vmem>>, vector<1x8x128xf32>,
    return
  }
  func.func @transform_1(%arg0: i32, %arg1: i32, %arg2: memref<16xi32, #tpu.memory_space<smem>>) -> (i32, i32, i32) {
    %c0_i32 = arith.constant 0 : i32
    %c0_i32_0 = arith.constant 0 : i32
    %c0_i32_1 = arith.constant 0 : i32
    return %c0_i32, %arg1, %c0_i32_0 : i32, i32, i32
  }
  func.func @transform_2(%arg0: i32, %arg1: i32, %arg2: memref<16xi32, #tpu.memory_space<smem>>) -> (i32, i32, i32) {
    %c0_i32 = arith.constant 0 : i32
    %c0_i32_0 = arith.constant 0 : i32
    return %arg0, %arg1, %c0_i32 : i32, i32, i32
  }
}

</mosaic_0001>

<bundles_post_ra>
// kernel: tpu_custom_call.1
= control target key start
LH: loop header
LB: loop body
LE: loop exit
PB: predicated region body
PF: predicated region fallthrough
CT: control target
= control target key end

     0   :  { %s1326_s0 = inlined_call_operand.hbm [shape: s32[16], index: 0, kind: input, shape index: {}]   ;;  %s1327_s1 = inlined_call_operand.hbm [shape: f32[32,128], index: 1, kind: input, shape index: {}]   ;;  %s1328_s2 = inlined_call_operand.hbm [shape: f32[1,8,128], index: 2, kind: input, shape index: {}]   ;;  %s1329_s3 = inlined_call_operand.hbm [shape: f32[2,8,128], index: 3, kind: output, shape index: {}]  }
   0x1   :  { %1337 = sst [smem:[#allocation41_spill]] %s1328_s2  ;;  %s638_s14 = scalar_lea.hbm %s1326_s0, 16 }
   0x2   :  { %p639_p0 = scmp.ne.s32.totalorder %s1326_s0, %s638_s14  ;;  %p642_p1 = scmp.lt.u32.totalorder %s638_s14, %s1326_s0 }
   0x4   :  { %p644_p2 = pnand %p642_p1, %p639_p0 }
   0x6   :  { %647 = shalt.err (!%p644_p2)  }
   0x7   :  { %s970_s19 = smov [#allocation5]  }
   0x8   :  { %9 = dma.hbm_to_smem %s1326_s0, 16, %s970_s19, [#allocation4] }
   0x9   :  { %920 = dma.done.wait [#allocation4], 16 }
   0xa   :  { %921 = vsyncadd [#allocation4], 4294967280 }
   0xb   :  { %11 = sfence }
   0xc   :  { %12 = vsyncpa [#allocation7], 0 }
   0xd   :  { %13 = vsyncpa [#allocation8], 0 }
   0xe   :  { %15 = vsyncpa [#allocation8 + $0x1], 0  ;;  %s1013_s22 = smov 0   ;;  %s1015_s23 = smov 0  }
   0xf   :  { %s1017_s24 = smov 0   ;;  %s1019_s25 = smov 0  }
  0x10   :  { %s1021_s26 = smov 0   ;;  %s1023_s27 = smov 0  }
  0x11 LB: > { %1338 = sst [smem:[#allocation39_spill]] %s964_s26  ;;  %s479_s0 = sadd.s32 4294967295, %s968_s27   ;;  %s968_s27 = sphi %s1023_s27, %s21_s27   ;;  %s964_s26 = sphi %s1021_s26, %s1354_s26   ;;  %s960_s25 = sphi %s1019_s25, %s1353_s25   ;;  %s956_s24 = sphi %s1017_s24, %s1357_s24   ;;  %s952_s23 = sphi %s1015_s23, %s1356_s23   ;;  %s948_s22 = sphi %s1013_s22, %s1355_s22  }
  0x12   : > { %s480_s28 = sadd.s32 4294967294, %s968_s27   ;;  %s33_s29 = sadd.s32 1, %s964_s26 }
  0x13   : > { %s68_s30 = sadd.s32 1, %s956_s24  ;;  %p35_p3 = scmp.ge.s32.totalorder %s33_s29, 2 }
  0x14   : > { %p78_p4 = scmp.ne.s32.totalorder %s956_s24, %s952_s23  ;;  %p79_p5 = scmp.eq.s32.totalorder %s479_s0, 1 }
  0x15   : > { %p84_p6 = scmp.ne.s32.totalorder %s952_s23, %s948_s22  ;;  %s1359_s29 = smov (%p35_p3, %s33_s29), 0 }
  0x16   : > { %1339 = sst [smem:[#allocation40_spill]] %s1359_s29  ;;  %p1053_p7 = por %p79_p5, %p78_p4 }
  0x17   : > { %p85_p8 = scmp.eq.s32.totalorder %s480_s28, 1  ;;  %s63_s5 = ssub.s32 %s964_s26, %s1359_s29 }
  0x18   : > { %s1340_s4 = scalar_select %p1053_p7, 1, 0 }
  0x19   : > { %p481_p9 = scmp.ge.s32.totalorder %s968_s27, 1  ;;  %p66_p10 = scmp.eq.s32.totalorder %s63_s5, 0 }
  0x1a   : > { %p1060_p11 = por %p85_p8, %p84_p6  ;;  %p92_p12 = scmp.lt.s32.totalorder %s968_s27, 3 }
  0x1b   : > { %s1066_s7 = scalar_select %p66_p10, %s956_s24, %s68_s30  }
  0x1c   : > { %s1341_s6 = scalar_select %p1060_p11, 1, 0 }
  0x1d   : > { %p1068_p13 = pnand %p481_p9, %p92_p12  ;;  %p1072_p0 = scmp.eq.s32.totalorder %s479_s0, 0 }
  0x1e   : > { %s971_s10 = smov [#allocation6]   ;;  %s1345_s2 = sld [smem:[#allocation41_spill]] }
  0x1f   : > { %s1342_s8 = scalar_select %p1068_p13, 1, 0 }
  0x20   : > { %s1343_s9 = scalar_select %p1072_p0, 1, 0 }
  0x21   : > { %p569_p1 = pneg %p1068_p13  ;;  %s107_s11 = sshll.u32 %s971_s10, 4  ;;  %s108_s11 = int_to_ptr.vmem [resolvable:$true] %s107_s11 }
  0x23   : > { %p1080_p2 = pnand %p1072_p0, %p569_p1 }
  0x24   : > { %s648_s15 = scalar_lea.hbm %s1345_s2, 128 }
  0x25   : > { %p649_p3 = scmp.ne.s32.totalorder %s1345_s2, %s648_s15  ;;  %p650_p4 = pneg %p1080_p2 }
  0x26   : > { %p655_p8 = scmp.lt.u32.totalorder %s648_s15, %s1345_s2 }
  0x27   : > { %p651_p5 = pnand %p650_p4, %p649_p3 }
  0x29   : > { %p652_p6 = pneg %p651_p5 }
  0x2b   : > { %p657_p9 = pnand %p655_p8, %p652_p6 }
  0x2d   : > { %660 = shalt.err (!%p657_p9)
}
  0x2e   : > { %s661_s20 = scalar_lea.vmem %s108_s11, 128  ;;  %p669_p11 = scmp.lt.s32.totalorder %s108_s11, %s108_s11 }
  0x2f   : > { %p662_p10 = scmp.ne.s32.totalorder %s108_s11, %s661_s20  ;;  %p670_p7 = scmp.lt.s32.totalorder %s661_s20, %s661_s20 }
  0x31   : > { %p664_p12 = pnand %p662_p10, %p650_p4  ;;  %p671_p0 = por %p670_p7, %p669_p11 }
  0x33   : > { %p665_p1 = pneg %p664_p12 }
  0x35   : > { %p672_p13 = pnand %p671_p0, %p665_p1 }
  0x37   : > { %675 = shalt.err (!%p672_p13)
}
  0x38   : > { %572 = dma.hbm_to_vmem [thread:$0]  (!%p1080_p2), %s1345_s2, 128, %s108_s11, [#allocation7]  }
  0x39   : > { %p1346_p3 = scmp.ne.s32.totalorder %s1342_s8, 0 }
  0x3a   : > { %p1347_p5 = scmp.ne.s32.totalorder (!%p1346_p3), %s1343_s9, 0 }
  0x3b   : > { %120 = sbr.rel (%p1346_p3) target bundleno = 318 (0x13e), region = 24 }
  0x42   : > { %923 = dma.done.wait (%p1347_p5), [#allocation7], 128  }
  0x43   : > { %925 = vsyncadd (%p1347_p5), [#allocation7], 4294967168  ;;  %s1334_s28 = sand.u32 1, %s952_s23   ;;  %s1108_s30 = sshll.u32 %s960_s25, 3 }
  0x44   : > { %s1112_s5 = sshll.u32 %s1334_s28, 3  ;;  %s137_s8 = sld [smem:[#allocation5 + %s1108_s30]] }
  0x45   : > { %s972_s10 = smov [#allocation2]   ;;  %s155_s12 = sadd.s32 1, %s1108_s30 }
  0x46   : > { %s151_s11 = sshll.u32 %s972_s10, 4  ;;  %s1118_s9 = sld [smem:[#allocation5 + %s155_s12]]  ;;  %s1116_s11 = int_to_ptr.vmem [resolvable:$true] %s151_s11 }
  0x47   : > { %s176_s13 = sadd.s32 2, %s1108_s30  ;;  %s973_s14 = smov [#allocation2 + $0x1]  }
  0x48   : > { %s172_s15 = sshll.u32 %s973_s14, 4  ;;  %s1121_s16 = sld [smem:[#allocation5 + %s176_s13]]  ;;  %s1123_s15 = int_to_ptr.vmem [resolvable:$true] %s172_s15 }
  0x49   : > { %s1136_s13 = scalar_lea.hbm %s1327_s1, 512 }
  0x4a   : > { %p138_p7 = scmp.gt.s32.totalorder %s137_s8, 0  ;;  %p487_p11 = scmp.lt.s32.totalorder %s137_s8, 31 }
  0x4c   : > { %s1361_s8 = smov (!%p138_p7, %s137_s8), 0  ;;  %p157_p13 = scmp.gt.s32.totalorder %s1118_s9, 0 }
  0x4d   : > { %p493_p0 = scmp.lt.s32.totalorder %s1118_s9, 31  ;;  %s1363_s8 = smov (!%p487_p11, %s1361_s8), 31 }
  0x4e   : > { %s158_s17 = scalar_select %p157_p13, %s1118_s9, 0 }
  0x4f   : > { %s492_s18 = sshll.u32 %s1363_s8, 4  ;;  %p178_p2 = scmp.gt.s32.totalorder %s1121_s16, 0 }
  0x50   : > { %s143_s21 = scalar_lea.hbm %s1327_s1, %s492_s18 }
  0x51   : > { %s676_s0 = scalar_lea.hbm %s143_s21, 16  ;;  %p679_p8 = scmp.lt.u32.totalorder %s143_s21, %s1327_s1 }
  0x52   : > { %p677_p6 = scmp.ne.s32.totalorder %s143_s21, %s676_s0  ;;  %p680_p9 = scmp.lt.u32.totalorder %s1136_s13, %s676_s0 }
  0x53   : > { %p682_p12 = scmp.lt.u32.totalorder %s676_s0, %s143_s21 }
  0x54   : > { %p681_p10 = por %p680_p9, %p679_p8 }
  0x56   : > { %p683_p1 = por %p682_p12, %p681_p10 }
  0x58   : > { %p684_p3 = pnand %p683_p1, %p677_p6 }
  0x5a   : > { %687 = shalt.err (!%p684_p3)  }
  0x5b   : > { %s688_s8 = scalar_lea.vmem %s1116_s11, 16  ;;  %s1145_s18 = scalar_lea.vmem %s1116_s11, 128 }
  0x5c   : > { %p689_p5 = scmp.ne.s32.totalorder %s1116_s11, %s688_s8  ;;  %p693_p7 = scmp.lt.s32.totalorder %s1116_s11, %s1116_s11 }
  0x5d   : > { %p694_p11 = scmp.lt.s32.totalorder %s1145_s18, %s688_s8 }
  0x5f   : > { %p695_p13 = por %p694_p11, %p693_p7 }
  0x61   : > { %p696_p4 = pnand %p695_p13, %p689_p5 }
  0x63   : > { %699 = shalt.err (!%p696_p4)  }
  0x64   : > { %154 = dma.hbm_to_vmem [thread:$0]  %s143_s21, 16, %s1116_s11, [#allocation3] }
  0x65   : > { %s1365_s17 = smov (!%p493_p0, %s158_s17), 31  ;;  %s974_s20 = smov [#allocation2 + $0x2]  }
  0x66   : > { %s179_s28 = scalar_select %p178_p2, %s1121_s16, 0 }
  0x67   : > { %s498_s19 = sshll.u32 %s1365_s17, 4  ;;  %s193_s0 = sshll.u32 %s974_s20, 4  ;;  %s1159_s0 = int_to_ptr.vmem [resolvable:$true] %s193_s0 }
  0x68   : > { %s162_s14 = scalar_lea.hbm %s1327_s1, %s498_s19 }
  0x69   : > { %s700_s8 = scalar_lea.hbm %s162_s14, 16  ;;  %p703_p6 = scmp.lt.u32.totalorder %s162_s14, %s1327_s1 }
  0x6a   : > { %p701_p4 = scmp.ne.s32.totalorder %s162_s14, %s700_s8  ;;  %p704_p8 = scmp.lt.u32.totalorder %s1136_s13, %s700_s8 }
  0x6b   : > { %p706_p0 = scmp.lt.u32.totalorder %s700_s8, %s162_s14 }
  0x6c   : > { %p705_p9 = por %p704_p8, %p703_p6 }
  0x6e   : > { %p707_p10 = por %p706_p0, %p705_p9 }
  0x70   : > { %p708_p2 = pnand %p707_p10, %p701_p4 }
  0x72   : > { %711 = shalt.err (!%p708_p2)  }
  0x73   : > { %s712_s9 = scalar_lea.vmem %s1123_s15, 16  ;;  %p717_p1 = scmp.lt.s32.totalorder %s1123_s15, %s1116_s11 }
  0x74   : > { %p713_p12 = scmp.ne.s32.totalorder %s1123_s15, %s712_s9  ;;  %p718_p3 = scmp.lt.s32.totalorder %s1145_s18, %s712_s9 }
  0x76   : > { %p719_p5 = por %p718_p3, %p717_p1 }
  0x78   : > { %p720_p7 = pnand %p719_p5, %p713_p12 }
  0x7a   : > { %723 = shalt.err (!%p720_p7)  }
  0x7b   : > { %175 = dma.hbm_to_vmem [thread:$0]  %s162_s14, 16, %s1123_s15, [#allocation3 + $0x1] }
  0x7c   : > { %p1348_p11 = scmp.lt.s32.totalorder %s1121_s16, 31  ;;  %s197_s2 = sadd.s32 3, %s1108_s30 }
  0x7d   : > { %s1174_s17 = sld [smem:[#allocation5 + %s197_s2]] }
  0x7e   : > { %s1367_s28 = smov (!%p1348_p11, %s179_s28), 31 }
  0x7f   : > { %s504_s29 = sshll.u32 %s1367_s28, 4 }
  0x80   : > { %s183_s20 = scalar_lea.hbm %s1327_s1, %s504_s29 }
  0x81   : > { %s724_s10 = scalar_lea.hbm %s183_s20, 16  ;;  %p727_p4 = scmp.lt.u32.totalorder %s183_s20, %s1327_s1 }
  0x82   : > { %p725_p13 = scmp.ne.s32.totalorder %s183_s20, %s724_s10  ;;  %p728_p6 = scmp.lt.u32.totalorder %s1136_s13, %s724_s10 }
  0x83   : > { %p730_p9 = scmp.lt.u32.totalorder %s724_s10, %s183_s20 }
  0x84   : > { %p729_p8 = por %p728_p6, %p727_p4 }
  0x86   : > { %p731_p0 = por %p730_p9, %p729_p8 }
  0x88   : > { %p732_p10 = pnand %p731_p0, %p725_p13 }
  0x8a   : > { %735 = shalt.err (!%p732_p10)  }
  0x8b   : > { %s736_s15 = scalar_lea.vmem %s1159_s0, 16  ;;  %p741_p12 = scmp.lt.s32.totalorder %s1159_s0, %s1116_s11 }
  0x8c   : > { %p737_p2 = scmp.ne.s32.totalorder %s1159_s0, %s736_s15  ;;  %p742_p1 = scmp.lt.s32.totalorder %s1145_s18, %s736_s15 }
  0x8e   : > { %p743_p3 = por %p742_p1, %p741_p12 }
  0x90   : > { %p744_p5 = pnand %p743_p3, %p737_p2 }
  0x92   : > { %747 = shalt.err (!%p744_p5)  }
  0x93   : > { %196 = dma.hbm_to_vmem [thread:$0]  %s183_s20, 16, %s1159_s0, [#allocation3 + $0x2] }
  0x94   : > { %s975_s16 = smov [#allocation2 + $0x3]   ;;  %s218_s14 = sadd.s32 4, %s1108_s30 }
  0x95   : > { %s214_s28 = sshll.u32 %s975_s16, 4  ;;  %s1190_s9 = sld [smem:[#allocation5 + %s218_s14]]  ;;  %s215_s28 = int_to_ptr.vmem [resolvable:$true] %s214_s28 }
  0x96   : > { %s976_s2 = smov [#allocation2 + $0x4]   ;;  %s239_s21 = sadd.s32 5, %s1108_s30 }
  0x97   : > { %s235_s29 = sshll.u32 %s976_s2, 4  ;;  %p199_p7 = scmp.gt.s32.totalorder %s1174_s17, 0  ;;  %s1198_s29 = int_to_ptr.vmem [resolvable:$true] %s235_s29 }
  0x98   : > { %p505_p11 = scmp.lt.s32.totalorder %s1174_s17, 31  ;;  %s1195_s19 = sld [smem:[#allocation5 + %s239_s21]] }
  0x99   : > { %s1369_s17 = smov (!%p199_p7, %s1174_s17), 0  ;;  %s260_s0 = sadd.s32 6, %s1108_s30 }
  0x9a   : > { %s1371_s17 = smov (!%p505_p11, %s1369_s17), 31 }
  0x9b   : > { %p220_p13 = scmp.gt.s32.totalorder %s1190_s9, 0  ;;  %s510_s20 = sshll.u32 %s1371_s17, 4 }
  0x9c   : > { %s204_s8 = scalar_lea.hbm %s1327_s1, %s510_s20 }
  0x9d   : > { %s748_s15 = scalar_lea.hbm %s204_s8, 16  ;;  %p751_p9 = scmp.lt.u32.totalorder %s204_s8, %s1327_s1 }
  0x9e   : > { %p241_p6 = scmp.gt.s32.totalorder %s1195_s19, 0  ;;  %p749_p8 = scmp.ne.s32.totalorder %s204_s8, %s748_s15 }
  0x9f   : > { %p752_p0 = scmp.lt.u32.totalorder %s1136_s13, %s748_s15  ;;  %p754_p2 = scmp.lt.u32.totalorder %s748_s15, %s204_s8 }
  0xa1   : > { %p753_p10 = por %p752_p0, %p751_p9 }
  0xa3   : > { %p755_p12 = por %p754_p2, %p753_p10 }
  0xa5   : > { %p756_p1 = pnand %p755_p12, %p749_p8 }
  0xa7   : > { %759 = shalt.err (!%p756_p1)  }
  0xa8   : > { %s760_s2 = scalar_lea.vmem %s215_s28, 16  ;;  %p765_p5 = scmp.lt.s32.totalorder %s215_s28, %s1116_s11 }
  0xa9   : > { %p761_p3 = scmp.ne.s32.totalorder %s215_s28, %s760_s2  ;;  %p766_p7 = scmp.lt.s32.totalorder %s1145_s18, %s760_s2 }
  0xab   : > { %p767_p11 = por %p766_p7, %p765_p5 }
  0xad   : > { %p768_p4 = pnand %p767_p11, %p761_p3 }
  0xaf   : > { %771 = shalt.err (!%p768_p4)  }
  0xb0   : > { %217 = dma.hbm_to_vmem [thread:$0]  %s204_s8, 16, %s215_s28, [#allocation3 + $0x3] }
  0xb1   : > { %s221_s17 = scalar_select %p220_p13, %s1190_s9, 0 }
  0xb2   : > { %s242_s21 = scalar_select %p241_p6, %s1195_s19, 0 }
  0xb3   : > { %p1349_p8 = scmp.lt.s32.totalorder %s1190_s9, 31  ;;  %p517_p9 = scmp.lt.s32.totalorder %s1195_s19, 31 }
  0xb4   : > { %s977_s20 = smov [#allocation2 + $0x5]   ;;  %s1222_s15 = sld [smem:[#allocation5 + %s260_s0]] }
  0xb5   : > { %s1373_s17 = smov (!%p1349_p8, %s221_s17), 31  ;;  %s256_s10 = sshll.u32 %s977_s20, 4  ;;  %s257_s10 = int_to_ptr.vmem [resolvable:$true] %s256_s10 }
  0xb6   : > { %s516_s12 = sshll.u32 %s1373_s17, 4 }
  0xb7   : > { %s225_s16 = scalar_lea.hbm %s1327_s1, %s516_s12 }
  0xb8   : > { %s772_s14 = scalar_lea.hbm %s225_s16, 16  ;;  %p775_p13 = scmp.lt.u32.totalorder %s225_s16, %s1327_s1 }
  0xb9   : > { %p773_p4 = scmp.ne.s32.totalorder %s225_s16, %s772_s14  ;;  %p776_p0 = scmp.lt.u32.totalorder %s1136_s13, %s772_s14 }
  0xba   : > { %p778_p10 = scmp.lt.u32.totalorder %s772_s14, %s225_s16 }
  0xbb   : > { %p777_p6 = por %p776_p0, %p775_p13 }
  0xbd   : > { %p779_p2 = por %p778_p10, %p777_p6 }
  0xbf   : > { %p780_p12 = pnand %p779_p2, %p773_p4 }
  0xc1   : > { %783 = shalt.err (!%p780_p12)  }
  0xc2   : > { %s784_s9 = scalar_lea.vmem %s1198_s29, 16  ;;  %p789_p3 = scmp.lt.s32.totalorder %s1198_s29, %s1116_s11 }
  0xc3   : > { %p785_p1 = scmp.ne.s32.totalorder %s1198_s29, %s784_s9  ;;  %p790_p5 = scmp.lt.s32.totalorder %s1145_s18, %s784_s9 }
  0xc5   : > { %p791_p7 = por %p790_p5, %p789_p3 }
  0xc7   : > { %p792_p11 = pnand %p791_p7, %p785_p1 }
  0xc9   : > { %795 = shalt.err (!%p792_p11)  }
  0xca   : > { %238 = dma.hbm_to_vmem [thread:$0]  %s225_s16, 16, %s1198_s29, [#allocation3 + $0x4] }
  0xcb   : > { %s1375_s21 = smov (!%p517_p9, %s242_s21), 31  ;;  %s978_s26 = smov [#allocation2 + $0x6]  }
  0xcc   : > { %s277_s0 = sshll.u32 %s978_s26, 4  ;;  %s522_s17 = sshll.u32 %s1375_s21, 4  ;;  %s278_s0 = int_to_ptr.vmem [resolvable:$true] %s277_s0 }
  0xcd   : > { %s281_s20 = sadd.s32 7, %s1108_s30  ;;  %s246_s8 = scalar_lea.hbm %s1327_s1, %s522_s17 }
  0xce   : > { %p262_p8 = scmp.gt.s32.totalorder %s1222_s15, 0  ;;  %s796_s14 = scalar_lea.hbm %s246_s8, 16 }
  0xcf   : > { %p797_p4 = scmp.ne.s32.totalorder %s246_s8, %s796_s14  ;;  %p799_p13 = scmp.lt.u32.totalorder %s246_s8, %s1327_s1 }
  0xd0   : > { %p800_p0 = scmp.lt.u32.totalorder %s1136_s13, %s796_s14  ;;  %p802_p10 = scmp.lt.u32.totalorder %s796_s14, %s246_s8 }
  0xd2   : > { %p801_p6 = por %p800_p0, %p799_p13 }
  0xd4   : > { %p803_p9 = por %p802_p10, %p801_p6 }
  0xd6   : > { %p804_p2 = pnand %p803_p9, %p797_p4 }
  0xd8   : > { %807 = shalt.err (!%p804_p2)  }
  0xd9   : > { %s808_s29 = scalar_lea.vmem %s257_s10, 16  ;;  %p813_p1 = scmp.lt.s32.totalorder %s257_s10, %s1116_s11 }
  0xda   : > { %p809_p12 = scmp.ne.s32.totalorder %s257_s10, %s808_s29  ;;  %p814_p3 = scmp.lt.s32.totalorder %s1145_s18, %s808_s29 }
  0xdc   : > { %p815_p5 = por %p814_p3, %p813_p1 }
  0xde   : > { %p816_p7 = pnand %p815_p5, %p809_p12 }
  0xe0   : > { %819 = shalt.err (!%p816_p7)  }
  0xe1   : > { %259 = dma.hbm_to_vmem [thread:$0]  %s246_s8, 16, %s257_s10, [#allocation3 + $0x5] }
  0xe2   : > { %s263_s30 = scalar_select %p262_p8, %s1222_s15, 0 }
  0xe3   : > { %p523_p11 = scmp.lt.s32.totalorder %s1222_s15, 31  ;;  %s282_s19 = sld [smem:[#allocation5 + %s281_s20]] }
  0xe5   : > { %s1377_s30 = smov (!%p523_p11, %s263_s30), 31 }
  0xe6   : > { %s528_s21 = sshll.u32 %s1377_s30, 4 }
  0xe7   : > { %s267_s17 = scalar_lea.hbm %s1327_s1, %s528_s21 }
  0xe8   : > { %s820_s12 = scalar_lea.hbm %s267_s17, 16  ;;  %p823_p13 = scmp.lt.u32.totalorder %s267_s17, %s1327_s1 }
  0xe9   : > { %p821_p4 = scmp.ne.s32.totalorder %s267_s17, %s820_s12  ;;  %p824_p0 = scmp.lt.u32.totalorder %s1136_s13, %s820_s12 }
  0xea   : > { %p826_p10 = scmp.lt.u32.totalorder %s820_s12, %s267_s17 }
  0xeb   : > { %p825_p6 = por %p824_p0, %p823_p13 }
  0xed   : > { %p827_p9 = por %p826_p10, %p825_p6 }
  0xef   : > { %p828_p8 = pnand %p827_p9, %p821_p4 }
  0xf1   : > { %831 = shalt.err (!%p828_p8)  }
  0xf2   : > { %s832_s10 = scalar_lea.vmem %s278_s0, 16  ;;  %p837_p12 = scmp.lt.s32.totalorder %s278_s0, %s1116_s11 }
  0xf3   : > { %p833_p2 = scmp.ne.s32.totalorder %s278_s0, %s832_s10  ;;  %p838_p1 = scmp.lt.s32.totalorder %s1145_s18, %s832_s10 }
  0xf5   : > { %p839_p3 = por %p838_p1, %p837_p12 }
  0xf7   : > { %p840_p5 = pnand %p839_p3, %p833_p2 }
  0xf9   : > { %843 = shalt.err (!%p840_p5)  }
  0xfa   : > { %280 = dma.hbm_to_vmem [thread:$0]  %s267_s17, 16, %s278_s0, [#allocation3 + $0x6] }
  0xfb   : > { %p283_p7 = scmp.gt.s32.totalorder %s282_s19, 0  ;;  %p529_p11 = scmp.lt.s32.totalorder %s282_s19, 31 }
  0xfc   : > { %s979_s15 = smov [#allocation2 + $0x7]  }
  0xfd   : > { %s298_s20 = sshll.u32 %s979_s15, 4  ;;  %s1379_s19 = smov (!%p283_p7, %s282_s19), 0  ;;  %s299_s20 = int_to_ptr.vmem [resolvable:$true] %s298_s20 }
  0xfe   : > { %s1381_s19 = smov (!%p529_p11, %s1379_s19), 31 }
  0xff   : > { %s534_s8 = sshll.u32 %s1381_s19, 4 }
 0x100   : > { %s288_s29 = scalar_lea.hbm %s1327_s1, %s534_s8 }
 0x101   : > { %s844_s30 = scalar_lea.hbm %s288_s29, 16  ;;  %p847_p13 = scmp.lt.u32.totalorder %s288_s29, %s1327_s1 }
 0x102   : > { %p845_p4 = scmp.ne.s32.totalorder %s288_s29, %s844_s30  ;;  %p848_p0 = scmp.lt.u32.totalorder %s1136_s13, %s844_s30 }
 0x103   : > { %p850_p10 = scmp.lt.u32.totalorder %s844_s30, %s288_s29 }
 0x104   : > { %p849_p6 = por %p848_p0, %p847_p13 }
 0x106   : > { %p851_p9 = por %p850_p10, %p849_p6 }
 0x108   : > { %p852_p8 = pnand %p851_p9, %p845_p4 }
 0x10a   : > { %855 = shalt.err (!%p852_p8)  }
 0x10b   : > { %s856_s0 = scalar_lea.vmem %s299_s20, 16  ;;  %p861_p12 = scmp.lt.s32.totalorder %s299_s20, %s1116_s11 }
 0x10c   : > { %p857_p2 = scmp.ne.s32.totalorder %s299_s20, %s856_s0  ;;  %p862_p1 = scmp.lt.s32.totalorder %s1145_s18, %s856_s0 }
 0x10e   : > { %p863_p3 = por %p862_p1, %p861_p12 }
 0x110   : > { %p864_p5 = pnand %p863_p3, %p857_p2 }
 0x112   : > { %867 = shalt.err (!%p864_p5)  }
 0x113   : > { %301 = dma.hbm_to_vmem [thread:$0]  %s288_s29, 16, %s299_s20, [#allocation3 + $0x7] }
 0x114   : > { %s134_s19 = scalar_lea.vmem [#allocation9], %s1112_s5 }
 0x115   : > { %926 = dma.done.wait [#allocation3], 16 }
 0x116   : > { %927 = vsyncadd [#allocation3], 4294967280 }
 0x117   : > { %928 = dma.done.wait [#allocation3 + $0x1], 16 }
 0x118   : > { %929 = vsyncadd [#allocation3 + $0x1], 4294967280 }
 0x119   : > { %930 = dma.done.wait [#allocation3 + $0x2], 16 }
 0x11a   : > { %931 = vsyncadd [#allocation3 + $0x2], 4294967280 }
 0x11b   : > { %932 = dma.done.wait [#allocation3 + $0x3], 16 }
 0x11c   : > { %933 = vsyncadd [#allocation3 + $0x3], 4294967280 }
 0x11d   : > { %934 = dma.done.wait [#allocation3 + $0x4], 16 }
 0x11e   : > { %935 = vsyncadd [#allocation3 + $0x4], 4294967280 }
 0x11f   : > { %936 = dma.done.wait [#allocation3 + $0x5], 16 }
 0x120   : > { %937 = vsyncadd [#allocation3 + $0x5], 4294967280 }
 0x121   : > { %938 = dma.done.wait [#allocation3 + $0x6], 16 }
 0x122   : > { %939 = vsyncadd [#allocation3 + $0x6], 4294967280 }
 0x123   : > { %940 = dma.done.wait [#allocation3 + $0x7], 16 }
 0x124   : > { %941 = vsyncadd [#allocation3 + $0x7], 4294967280  ;;  %s536_s5 = sshll.u32 %s960_s25, 7  ;;  %s338_s11 = sshll.u32 %s134_s19, 4  ;;  %v319_v0 = vld [vmem:[#allocation2] sm:$0xff]  ;;  %v320_v1 = vld [vmem:[#allocation6] sm:$0xff]  ;;  %s1279_s11 = int_to_ptr.vmem [resolvable:$true] %s338_s11 }
 0x125   : > { %v321_v2 = vadd.f32 %v320_v1, %v319_v0  ;;  %s1277_s26 = scalar_lea.hbm %s1329_s3, %s536_s5  ;;  %s1350_s17 = sand.u32 1, %s952_s23  }
 0x126   : > { %s324_s12 = scalar_lea.sflag [#allocation8], %s1350_s17  ;;  %s868_s28 = scalar_lea.vmem %s1279_s11, 128 }
 0x127   : > { %322 = vst [vmem:[%s134_s19] sm:$0xff] %v321_v2  ;;  %p869_p7 = scmp.ne.s32.totalorder %s1279_s11, %s868_s28  ;;  %p1351_p11 = scmp.ne.s32.totalorder %s1340_s4, 0 }
 0x128   : > { %s980_s25 = smov [#allocation9]  }
 0x129   : > { %p870_p4 = pnand %p869_p7, %p1351_p11  ;;  %s872_s14 = sshll.u32 %s980_s25, 4  ;;  %s873_s14 = int_to_ptr.vmem [resolvable:$false] %s872_s14 }
 0x12a   : > { %s874_s10 = scalar_lea.vmem %s873_s14, 256  ;;  %p875_p0 = scmp.lt.s32.totalorder %s1279_s11, %s873_s14 }
 0x12b   : > { %p871_p13 = pneg %p870_p4  ;;  %p876_p6 = scmp.lt.s32.totalorder %s874_s10, %s868_s28 }
 0x12d   : > { %p877_p10 = por %p876_p6, %p875_p0 }
 0x12f   : > { %p878_p9 = pnand %p877_p10, %p871_p13 }
 0x131   : > { %881 = shalt.err (!%p878_p9)
}
 0x132   : > { %s882_s15 = scalar_lea.hbm %s1277_s26, 128  ;;  %s886_s2 = scalar_lea.hbm %s1329_s3, 256 }
 0x133   : > { %p883_p8 = scmp.ne.s32.totalorder %s1277_s26, %s882_s15  ;;  %p887_p1 = scmp.lt.u32.totalorder %s1277_s26, %s1329_s3 }
 0x134   : > { %p888_p3 = scmp.lt.u32.totalorder %s886_s2, %s882_s15  ;;  %p890_p7 = scmp.lt.u32.totalorder %s882_s15, %s1277_s26 }
 0x135   : > { %p884_p2 = pnand %p883_p8, %p1351_p11 }
 0x136   : > { %p889_p5 = por %p888_p3, %p887_p1 }
 0x137   : > { %p885_p12 = pneg %p884_p2 }
 0x138   : > { %p891_p4 = por %p890_p7, %p889_p5 }
 0x13a   : > { %p892_p13 = pnand %p891_p4, %p885_p12 }
 0x13c   : > { %895 = shalt.err (!%p892_p13)
}
 0x13d   : > { %567 = dma.vmem_to_hbm [thread:$0]  (%p1351_p11), %s1279_s11, 128, %s1277_s26, %s324_s12  }
 0x13e PF: > { %p579_p0 = scmp.ge.s32.totalorder %s968_s27, 2  ;;  %s350_s30 = sand.u32 1, %s948_s22  }
 0x13f   : > { %p1352_p6 = scmp.ne.s32.totalorder %s1341_s6, 0  ;;  %s351_s21 = scalar_lea.sflag [#allocation8], %s350_s30 }
 0x141   : > { %p574_p10 = pnand %p579_p0, %p1352_p6 }
 0x143   : > { %943 = dma.done.wait (!%p574_p10), %s351_s21, 128  }
 0x144   : > { %945 = vsyncadd (!%p574_p10), %s351_s21, 4294967168  ;;  %s21_s27 = sadd.s32 1, %s968_s27   ;;  %s1353_s25 = sld [smem:[#allocation39_spill]] }
 0x145   : > { %p18_p9 = scmp.ge.s32.totalorder %s21_s27, 4   ;;  %s1354_s26 = sld [smem:[#allocation40_spill]] }
 0x146   : > { %s1355_s22 = smov %s952_s23  ;;  %s1356_s23 = smov %s956_s24 }
 0x147   : > { %s1357_s24 = smov %s1066_s7  ;;  %20 = sbr.rel (!%p18_p9) target bundleno = 17 (0x11), region = 123 }
 0x14e   :  { %356 = vsyncpa [#allocation7], 1 }
 0x14f   :  { %358 = vsyncpa [#allocation7 + $0x1], 1 }
 0x150   :  { %359 = vsyncpa [#allocation8], 1 }
 0x151   :  { %361 = vsyncpa [#allocation8 + $0x1], 1 }
 0x152   :  { %362 = vsyncmov [#allocation3] }
 0x155   :  { %s363_s4 = vpop.sfrf %362 }
 0x156   :  { %p539_p11 = scmp.ne.s32.totalorder %s363_s4, 0 }
 0x158   :  { %367 = shalt.err (%p539_p11)  }
 0x159   :  { %369 = vsyncmov [#allocation3 + $0x1] }
 0x15c   :  { %s370_s6 = vpop.sfrf %369 }
 0x15d   :  { %p540_p8 = scmp.ne.s32.totalorder %s370_s6, 0 }
 0x15f   :  { %374 = shalt.err (%p540_p8)  }
 0x160   :  { %376 = vsyncmov [#allocation3 + $0x2] }
 0x163   :  { %s377_s7 = vpop.sfrf %376 }
 0x164   :  { %p541_p2 = scmp.ne.s32.totalorder %s377_s7, 0 }
 0x166   :  { %381 = shalt.err (%p541_p2)  }
 0x167   :  { %383 = vsyncmov [#allocation3 + $0x3] }
 0x16a   :  { %s384_s16 = vpop.sfrf %383 }
 0x16b   :  { %p542_p12 = scmp.ne.s32.totalorder %s384_s16, 0 }
 0x16d   :  { %388 = shalt.err (%p542_p12)  }
 0x16e   :  { %390 = vsyncmov [#allocation3 + $0x4] }
 0x171   :  { %s391_s1 = vpop.sfrf %390 }
 0x172   :  { %p543_p1 = scmp.ne.s32.totalorder %s391_s1, 0 }
 0x174   :  { %395 = shalt.err (%p543_p1)  }
 0x175   :  { %397 = vsyncmov [#allocation3 + $0x5] }
 0x178   :  { %s398_s3 = vpop.sfrf %397 }
 0x179   :  { %p544_p3 = scmp.ne.s32.totalorder %s398_s3, 0 }
 0x17b   :  { %402 = shalt.err (%p544_p3)  }
 0x17c   :  { %404 = vsyncmov [#allocation3 + $0x6] }
 0x17f   :  { %s405_s22 = vpop.sfrf %404 }
 0x180   :  { %p545_p5 = scmp.ne.s32.totalorder %s405_s22, 0 }
 0x182   :  { %409 = shalt.err (%p545_p5)  }
 0x183   :  { %411 = vsyncmov [#allocation3 + $0x7] }
 0x186   :  { %s412_s23 = vpop.sfrf %411 }
 0x187   :  { %p546_p7 = scmp.ne.s32.totalorder %s412_s23, 0 }
 0x189   :  { %416 = shalt.err (%p546_p7)  }

</bundles_post_ra>
